<compile_context>
chip_gen: v5e
topology: v5e:2x2
jax: 0.10.0
libtpu: 0.0.40
codegen_flags: <defaults>
</compile_context>

<pallas_src>
import jax
import jax.numpy as jnp
from jax.experimental import pallas as pl
from jax.experimental.pallas import tpu as pltpu


def _round_up(x: int, m: int) -> int:
    return ((x + m - 1) // m) * m


def _cdiv(a: int, b: int) -> int:
    return (a + b - 1) // b


def softmax_classifier_forward(x, weight, bias, *, tm=512, tk=1024,
                               compute_dtype=None,
                               weight_resident_budget=16 * 1024 * 1024):
    """Equivalent of torch: Linear(n_inputs, n_outputs)(Flatten()(x)).

    x:       (N, C, H, W) (any trailing dims) float32
    weight:  (n_outputs, n_inputs)  -- PyTorch Linear layout
    bias:    (n_outputs,)
    returns  (N, n_outputs) float32 logits (no softmax, matching the module).
    """
    n = x.shape[0]
    x_flat = x.reshape(n, -1)                      # Flatten (plain-JAX glue)
    f = x_flat.shape[1]
    n_outputs = weight.shape[0]

    if compute_dtype is not None:
        x_flat = x_flat.astype(compute_dtype)
        weight = weight.astype(compute_dtype)
    in_dtype = x_flat.dtype
    in_bytes = jnp.dtype(in_dtype).itemsize
    sub = 16 if in_bytes == 2 else 8               # sublane packing

    # ---- tile selection -------------------------------------------------
    # tm: multiple of sublane; cap so the M grid has >=2 blocks when possible
    # (v7x megacore sharding of the "parallel" axis).
    tm = min(tm, _round_up(n, sub))
    tm = max(sub, min(tm, _round_up(_cdiv(n, 2), sub)))
    # tk: multiple of 128; K is the only axis we ever zero-pad (and only when
    # tk does not divide n_inputs) -- padded zeros contribute nothing.
    tk = min(tk, _round_up(f, 128))
    o_pad = _round_up(n_outputs, 128)              # lane-dense output

    f_pad = _round_up(f, tk)
    grid_m = _cdiv(n, tm)                          # ragged M: no x padding
    grid_k = f_pad // tk

    if f_pad != f:
        x_flat = jnp.pad(x_flat, ((0, 0), (0, f_pad - f)))

    # Weight: pad once (small), transpose once -> (f_pad, o_pad) so the kernel
    # contracts with a plain dot (no per-k XLU transpose of a weight tile).
    w_t = jnp.pad(weight, ((0, o_pad - n_outputs), (0, f_pad - f))).T
    b_p = jnp.pad(bias.astype(jnp.float32),
                  (0, o_pad - n_outputs)).reshape(1, o_pad)

    w_bytes = f_pad * o_pad * in_bytes
    weight_resident = w_bytes <= weight_resident_budget

    # ---- kernel -----------------------------------------------------------
    def kernel(x_ref, w_ref, b_ref, o_ref):
        k = pl.program_id(1)

        @pl.when(k == 0)
        def _():
            o_ref[...] = jnp.zeros_like(o_ref)

        if weight_resident:
            k_start = pl.multiple_of(k * tk, tk)
            w_chunk = w_ref[pl.ds(k_start, tk), :]
        else:
            w_chunk = w_ref[...]

        # (tm, tk) @ (tk, o_pad) -> f32, accumulated directly in the resident
        # output block (no separate acc scratch / epilogue copy).
        o_ref[...] += jnp.dot(x_ref[...], w_chunk,
                              preferred_element_type=jnp.float32)

        @pl.when(k == pl.num_programs(1) - 1)
        def _():
            o_ref[...] += b_ref[...]

    if weight_resident:
        w_spec = pl.BlockSpec((f_pad, o_pad), lambda i, k: (0, 0))
    else:
        w_spec = pl.BlockSpec((tk, o_pad), lambda i, k: (k, 0))

    # ---- VMEM budget & cost hint -------------------------------------------
    x_buf = 2 * tm * tk * in_bytes                     # x double buffer
    w_buf = 2 * (w_bytes if weight_resident else tk * o_pad * in_bytes)
    o_buf = 2 * tm * o_pad * 4
    est_vmem = x_buf + w_buf + o_buf + 2 * o_pad * 4
    vmem_limit = int(min(max(2 * est_vmem, 32 * 1024 * 1024),
                         64 * 1024 * 1024))            # stays within v7x 64 MiB

    w_reads = 1 if weight_resident else grid_m
    cost = pl.CostEstimate(
        flops=2 * n * f * o_pad,
        transcendentals=0,
        bytes_accessed=(in_bytes * n * f
                        + in_bytes * w_reads * f_pad * o_pad
                        + 4 * n * o_pad
                        + 4 * o_pad),
    )

    out_padded = pl.pallas_call(
        kernel,
        out_shape=jax.ShapeDtypeStruct((n, o_pad), jnp.float32),
        grid_spec=pltpu.PrefetchScalarGridSpec(
            num_scalar_prefetch=0,
            grid=(grid_m, grid_k),
            in_specs=[
                pl.BlockSpec((tm, tk), lambda i, k: (i, k)),    # x tile
                w_spec,                                         # weight
                pl.BlockSpec((1, o_pad), lambda i, k: (0, 0)),  # bias
            ],
            out_specs=pl.BlockSpec((tm, o_pad), lambda i, k: (i, 0)),
        ),
        compiler_params=pltpu.CompilerParams(
            dimension_semantics=("parallel", "arbitrary"),
            vmem_limit_bytes=vmem_limit,
        ),
        cost_estimate=cost,
    )(x_flat, w_t, b_p)

    return out_padded[:, :n_outputs]


if __name__ == "__main__":
    key = jax.random.PRNGKey(0)
    k_x, k_w, k_b = jax.random.split(key, 3)

    # Small shapes consistent with the module: x (N, C, H, W) -> flatten -> linear
    N, C, H, W = 2, 4, 16, 16
    n_inputs = C * H * W          # 1024
    n_outputs = 16

    x = jax.random.normal(k_x, (N, C, H, W), dtype=jnp.float32)

    # Deterministic PyTorch-style uniform(-1/sqrt(fan_in), 1/sqrt(fan_in)) init
    bound = 1.0 / (n_inputs ** 0.5)
    weight = jax.random.uniform(k_w, (n_outputs, n_inputs), jnp.float32,
                                minval=-bound, maxval=bound)
    bias = jax.random.uniform(k_b, (n_outputs,), jnp.float32,
                              minval=-bound, maxval=bound)

    out = softmax_classifier_forward(x, weight, bias)
    jax.block_until_ready(out)

    # Reference check in plain JAX
    ref = x.reshape(N, -1) @ weight.T + bias
    assert out.shape == (N, n_outputs)
    assert jnp.allclose(out, ref, atol=1e-4, rtol=1e-4)

    print("KERNEL_OK")
</pallas_src>

<mosaic_0001>
module attributes {stable_mosaic.version = 11 : i64} {
  func.func @kernel(%arg0: i32, %arg1: i32, %arg2: memref<8x1024xf32, #tpu.memory_space<vmem>>, %arg3: memref<1024x128xf32, #tpu.memory_space<vmem>>, %arg4: memref<1x128xf32, #tpu.memory_space<vmem>>, %arg5: memref<8x128xf32, #tpu.memory_space<vmem>>) attributes {dimension_semantics = [#tpu.dimension_semantics<parallel>, #tpu.dimension_semantics<arbitrary>], iteration_bounds = array<i64: 1, 1>, scalar_prefetch = 0 : i64, scratch_operands = 0 : i64, tpu.core_type = #tpu.core_type<tc>, window_params = [{transform_indices = @transform_0, window_bounds = array<i64: 8, 1024>}, {pipeline_mode = #tpu.pipeline_mode<synchronous>, transform_indices = @transform_1, window_bounds = array<i64: 1024, 128>}, {pipeline_mode = #tpu.pipeline_mode<synchronous>, transform_indices = @transform_2, window_bounds = array<i64: 1, 128>}, {transform_indices = @transform_3, window_bounds = array<i64: 8, 128>}]} {
    %c0_i32 = arith.constant 0 : i32
    %0 = arith.cmpi eq, %arg1, %c0_i32 : i32
    %1 = arith.extui %0 : i1 to i32
    %c0_i32_0 = arith.constant 0 : i32
    %2 = arith.cmpi ne, %1, %c0_i32_0 : i32
    scf.if %2 {
      %cst_9 = arith.constant 0.000000e+00 : f32
      %15 = vector.broadcast %cst_9 : f32 to vector<8x128xf32>
      %c0_10 = arith.constant 0 : index
      %c0_11 = arith.constant 0 : index
      %16 = vector.load %arg5[%c0_10, %c0_11] : memref<8x128xf32, #tpu.memory_space<vmem>>, vector<8x128xf32>
      tpu.vector_store %arg5[%c0_10, %c0_11], %15 {strides = array<i32>} : memref<8x128xf32, #tpu.memory_space<vmem>>, vector<8x128xf32>,
    } else {
    }
    %c1024_i32 = arith.constant 1024 : i32
    %3 = arith.muli %arg1, %c1024_i32 : i32
    %4 = tpu.assume_multiple %3, 1024 : i32
    %5 = arith.index_cast %4 : i32 to index
    %c0 = arith.constant 0 : index
    %6 = vector.load %arg3[%5, %c0] : memref<1024x128xf32, #tpu.memory_space<vmem>>, vector<1024x128xf32>
    %c0_1 = arith.constant 0 : index
    %c0_2 = arith.constant 0 : index
    %7 = vector.load %arg5[%c0_1, %c0_2] : memref<8x128xf32, #tpu.memory_space<vmem>>, vector<8x128xf32>
    %c0_3 = arith.constant 0 : index
    %c0_4 = arith.constant 0 : index
    %8 = vector.load %arg2[%c0_3, %c0_4] : memref<8x1024xf32, #tpu.memory_space<vmem>>, vector<8x1024xf32>
    %cst = arith.constant dense<0.000000e+00> : vector<8x128xf32>
    %9 = tpu.matmul %8, %6, %cst {dimension_numbers = #tpu.dot_dimension_numbers<[1], [0], [0], [1], [0, 0, 1, 1], [], []>} : vector<8x1024xf32>, vector<1024x128xf32>, vector<8x128xf32> -> vector<8x128xf32>
    %10 = arith.addf %7, %9 : vector<8x128xf32>
    %c0_5 = arith.constant 0 : index
    %c0_6 = arith.constant 0 : index
    %11 = vector.load %arg5[%c0_5, %c0_6] : memref<8x128xf32, #tpu.memory_space<vmem>>, vector<8x128xf32>
    tpu.vector_store %arg5[%c0_5, %c0_6], %10 {strides = array<i32>} : memref<8x128xf32, #tpu.memory_space<vmem>>, vector<8x128xf32>,
    %c0_i32_7 = arith.constant 0 : i32
    %12 = arith.cmpi eq, %arg1, %c0_i32_7 : i32
    %13 = arith.extui %12 : i1 to i32
    %c0_i32_8 = arith.constant 0 : i32
    %14 = arith.cmpi ne, %13, %c0_i32_8 : i32
    scf.if %14 {
      %c0_9 = arith.constant 0 : index
      %c0_10 = arith.constant 0 : index
      %15 = vector.load %arg5[%c0_9, %c0_10] : memref<8x128xf32, #tpu.memory_space<vmem>>, vector<8x128xf32>
      %c0_11 = arith.constant 0 : index
      %c0_12 = arith.constant 0 : index
      %16 = vector.load %arg4[%c0_11, %c0_12] : memref<1x128xf32, #tpu.memory_space<vmem>>, vector<1x128xf32>
      %17 = vector.broadcast %16 : vector<1x128xf32> to vector<8x128xf32>
      %18 = arith.addf %15, %17 : vector<8x128xf32>
      %c0_13 = arith.constant 0 : index
      %c0_14 = arith.constant 0 : index
      %19 = vector.load %arg5[%c0_13, %c0_14] : memref<8x128xf32, #tpu.memory_space<vmem>>, vector<8x128xf32>
      tpu.vector_store %arg5[%c0_13, %c0_14], %18 {strides = array<i32>} : memref<8x128xf32, #tpu.memory_space<vmem>>, vector<8x128xf32>,
    } else {
    }
    return
  }
  func.func @transform_0(%arg0: i32, %arg1: i32) -> (i32, i32) {
    %c0_i32 = arith.constant 0 : i32
    return %arg0, %arg1 : i32, i32
  }
  func.func @transform_1(%arg0: i32, %arg1: i32) -> (i32, i32) {
    %c0_i32 = arith.constant 0 : i32
    %c0_i32_0 = arith.constant 0 : i32
    %c0_i32_1 = arith.constant 0 : i32
    return %c0_i32, %c0_i32_0 : i32, i32
  }
  func.func @transform_2(%arg0: i32, %arg1: i32) -> (i32, i32) {
    %c0_i32 = arith.constant 0 : i32
    %c0_i32_0 = arith.constant 0 : i32
    %c0_i32_1 = arith.constant 0 : i32
    return %c0_i32, %c0_i32_0 : i32, i32
  }
  func.func @transform_3(%arg0: i32, %arg1: i32) -> (i32, i32) {
    %c0_i32 = arith.constant 0 : i32
    %c0_i32_0 = arith.constant 0 : i32
    return %arg0, %c0_i32 : i32, i32
  }
}

</mosaic_0001>

<bundles_post_ra>
// kernel: tpu_custom_call.1
= control target key start
LH: loop header
LB: loop body
LE: loop exit
PB: predicated region body
PF: predicated region fallthrough
CT: control target
= control target key end

     0   :  { %8 = vsyncpa [#allocation3], 0  ;;  %s552_s0 = inlined_call_operand.hbm [shape: f32[2,1024], index: 0, kind: input, shape index: {}]   ;;  %s553_s1 = inlined_call_operand.hbm [shape: f32[1024,128], index: 1, kind: input, shape index: {}]   ;;  %s554_s2 = inlined_call_operand.vmem [shape: f32[1,128], index: 2, kind: input, shape index: {}]   ;;  %s555_s3 = inlined_call_operand.hbm [shape: f32[2,128], index: 3, kind: output, shape index: {}]  }
   0x1   :  { %9 = vsyncpa [#allocation6], 0 }
   0x2   :  { %10 = vsyncpa [#allocation4], 0 }
   0x3   :  { %14 = vsyncadd [#allocation3], 768  ;;  %s15_s14 = sshll.u32 %s552_s0, 4  ;;  %s511_s15 = smov [#allocation2]   ;;  %s16_s14 = int_to_ptr.hbm [resolvable:$true] %s15_s14 }
   0x4   :  { %s17_s16 = sshll.u32 %s511_s15, 4  ;;  %s28_s19 = sshll.u32 %s553_s1, 4  ;;  %s18_s16 = int_to_ptr.vmem [resolvable:$true] %s17_s16  ;;  %s29_s19 = int_to_ptr.hbm [resolvable:$true] %s28_s19 }
   0x5   :  { %s512_s20 = smov 256   ;;  %s513_s21 = smov 16  }
   0x6   :  { %23 = dma.hbm_to_vmem [thread:$0]  %s16_s14, 256, %s18_s16, [#allocation3], %s512_s20, %s512_s20, %s513_s21  }
   0x7   :  { %s514_s22 = smov [#allocation5]   ;;  %s515_s24 = smov 128  }
   0x8   :  { %s30_s23 = sshll.u32 %s514_s22, 4  ;;  %s516_s25 = smov 8   ;;  %s31_s23 = int_to_ptr.vmem [resolvable:$true] %s30_s23 }
   0x9   :  { %36 = dma.hbm_to_vmem [thread:$0]  %s29_s19, 16384, %s31_s23, [#allocation6], %s515_s24, %s515_s24, %s516_s25  }
   0xa   :  { %505 = dma.done.wait [#allocation3], 1024  }
   0xb   :  { %506 = vsyncadd [#allocation3], 4294966272 }
   0xc   :  { %507 = dma.done.wait [#allocation6], 16384  }
   0xd   :  { %508 = vsyncadd [#allocation6], 4294950912  ;;  %v69_v0 = vld [vmem:[#allocation5 + $0x78] sm:$0xff]  ;;  %v68_v2 = vld [vmem:[#allocation5 + $0x70] sm:$0xff] }
   0xe   :  { %v101_v1 = vld [vmem:[#allocation5 + $0x178] sm:$0xff]  ;;  %230 = vmatpush.msra.mxu0 %v69_v0  ;;  %v100_v4 = vld [vmem:[#allocation5 + $0x170] sm:$0xff]  ;;  %v67_v6 = vld [vmem:[#allocation5 + $0x68] sm:$0xff] }
   0xf   :  { %270 = vmatpush.msra.mxu2 %v101_v1  ;;  %v85_v3 = vld [vmem:[#allocation5 + $0xf8] sm:$0xff]  ;;  %v84_v7 = vld [vmem:[#allocation5 + $0xf0] sm:$0xff]  ;;  %v99_v8 = vld [vmem:[#allocation5 + $0x168] sm:$0xff] }
  0x10   :  { %v117_v5 = vld [vmem:[#allocation5 + $0x1f8] sm:$0xff]  ;;  %250 = vmatpush.msra.mxu1 %v85_v3  ;;  %231 = vmatpush.msra.mxu0 %v68_v2  ;;  %v116_v9 = vld [vmem:[#allocation5 + $0x1f0] sm:$0xff]  ;;  %v83_v10 = vld [vmem:[#allocation5 + $0xe8] sm:$0xff] }
  0x11   :  { %290 = vmatpush.msra.mxu3 %v117_v5  ;;  %271 = vmatpush.msra.mxu2 %v100_v4  ;;  %v66_v11 = vld [vmem:[#allocation5 + $0x60] sm:$0xff]  ;;  %v115_v13 = vld [vmem:[#allocation5 + $0x1e8] sm:$0xff]  ;;  %v65_v16 = vld [vmem:[#allocation5 + $0x58] sm:$0xff] }
  0x12   :  { %251 = vmatpush.msra.mxu1 %v84_v7  ;;  %v98_v12 = vld [vmem:[#allocation5 + $0x160] sm:$0xff]  ;;  %232 = vmatpush.msra.mxu0 %v67_v6  ;;  %v97_v17 = vld [vmem:[#allocation5 + $0x158] sm:$0xff]  ;;  %v64_v20 = vld [vmem:[#allocation5 + $0x50] sm:$0xff] }
  0x13   :  { %291 = vmatpush.msra.mxu3 %v116_v9  ;;  %272 = vmatpush.msra.mxu2 %v99_v8  ;;  %v82_v14 = vld [vmem:[#allocation5 + $0xe0] sm:$0xff]  ;;  %v81_v18 = vld [vmem:[#allocation5 + $0xd8] sm:$0xff]  ;;  %v96_v21 = vld [vmem:[#allocation5 + $0x150] sm:$0xff] }
  0x14   :  { %v114_v15 = vld [vmem:[#allocation5 + $0x1e0] sm:$0xff]  ;;  %252 = vmatpush.msra.mxu1 %v83_v10  ;;  %233 = vmatpush.msra.mxu0 %v66_v11  ;;  %v113_v19 = vld [vmem:[#allocation5 + $0x1d8] sm:$0xff]  ;;  %v80_v22 = vld [vmem:[#allocation5 + $0xd0] sm:$0xff] }
  0x15   :  { %292 = vmatpush.msra.mxu3 %v115_v13  ;;  %273 = vmatpush.msra.mxu2 %v98_v12  ;;  %v112_v23 = vld [vmem:[#allocation5 + $0x1d0] sm:$0xff]  ;;  %v63_v24 = vld [vmem:[#allocation5 + $0x48] sm:$0xff]  ;;  %v62_v28 = vld [vmem:[#allocation5 + $0x40] sm:$0xff] }
  0x16   :  { %253 = vmatpush.msra.mxu1 %v82_v14  ;;  %234 = vmatpush.msra.mxu0 %v65_v16  ;;  %v95_v25 = vld [vmem:[#allocation5 + $0x148] sm:$0xff]  ;;  %v94_v29 = vld [vmem:[#allocation5 + $0x140] sm:$0xff]  ;;  %v61_v32 = vld [vmem:[#allocation5 + $0x38] sm:$0xff] }
  0x17   :  { %293 = vmatpush.msra.mxu3 %v114_v15  ;;  %274 = vmatpush.msra.mxu2 %v97_v17  ;;  %v79_v26 = vld [vmem:[#allocation5 + $0xc8] sm:$0xff]  ;;  %v78_v30 = vld [vmem:[#allocation5 + $0xc0] sm:$0xff]  ;;  %v93_v33 = vld [vmem:[#allocation5 + $0x138] sm:$0xff] }
  0x18   :  { %254 = vmatpush.msra.mxu1 %v81_v18  ;;  %235 = vmatpush.msra.mxu0 %v64_v20  ;;  %v111_v27 = vld [vmem:[#allocation5 + $0x1c8] sm:$0xff]  ;;  %v110_v31 = vld [vmem:[#allocation5 + $0x1c0] sm:$0xff]  ;;  %v77_v34 = vld [vmem:[#allocation5 + $0xb8] sm:$0xff] }
  0x19   :  { %294 = vmatpush.msra.mxu3 %v113_v19  ;;  %275 = vmatpush.msra.mxu2 %v96_v21  ;;  %v109_v35 = vld [vmem:[#allocation5 + $0x1b8] sm:$0xff]  ;;  %v60_v36 = vld [vmem:[#allocation5 + $0x30] sm:$0xff]  ;;  %v59_v40 = vld [vmem:[#allocation5 + $0x28] sm:$0xff] }
  0x1a   :  { %255 = vmatpush.msra.mxu1 %v80_v22  ;;  %236 = vmatpush.msra.mxu0 %v63_v24  ;;  %v92_v37 = vld [vmem:[#allocation5 + $0x130] sm:$0xff]  ;;  %v91_v41 = vld [vmem:[#allocation5 + $0x128] sm:$0xff]  ;;  %v58_v44 = vld [vmem:[#allocation5 + $0x20] sm:$0xff] }
  0x1b   :  { %295 = vmatpush.msra.mxu3 %v112_v23  ;;  %276 = vmatpush.msra.mxu2 %v95_v25  ;;  %v76_v38 = vld [vmem:[#allocation5 + $0xb0] sm:$0xff]  ;;  %v75_v42 = vld [vmem:[#allocation5 + $0xa8] sm:$0xff]  ;;  %v90_v45 = vld [vmem:[#allocation5 + $0x120] sm:$0xff] }
  0x1c   :  { %256 = vmatpush.msra.mxu1 %v79_v26  ;;  %237 = vmatpush.msra.mxu0 %v62_v28  ;;  %v108_v39 = vld [vmem:[#allocation5 + $0x1b0] sm:$0xff]  ;;  %v107_v43 = vld [vmem:[#allocation5 + $0x1a8] sm:$0xff]  ;;  %v74_v46 = vld [vmem:[#allocation5 + $0xa0] sm:$0xff] }
  0x1d   :  { %296 = vmatpush.msra.mxu3 %v111_v27  ;;  %277 = vmatpush.msra.mxu2 %v94_v29  ;;  %v106_v47 = vld [vmem:[#allocation5 + $0x1a0] sm:$0xff]  ;;  %v57_v48 = vld [vmem:[#allocation5 + $0x18] sm:$0xff]  ;;  %v56_v52 = vld [vmem:[#allocation5 + $0x10] sm:$0xff] }
  0x1e   :  { %257 = vmatpush.msra.mxu1 %v78_v30  ;;  %238 = vmatpush.msra.mxu0 %v61_v32  ;;  %v89_v49 = vld [vmem:[#allocation5 + $0x118] sm:$0xff]  ;;  %v88_v53 = vld [vmem:[#allocation5 + $0x110] sm:$0xff]  ;;  %v55_v56 = vld [vmem:[#allocation5 + $0x8] sm:$0xff] }
  0x1f   :  { %297 = vmatpush.msra.mxu3 %v110_v31  ;;  %278 = vmatpush.msra.mxu2 %v93_v33  ;;  %v73_v50 = vld [vmem:[#allocation5 + $0x98] sm:$0xff]  ;;  %v72_v54 = vld [vmem:[#allocation5 + $0x90] sm:$0xff]  ;;  %v87_v57 = vld [vmem:[#allocation5 + $0x108] sm:$0xff] }
  0x20   :  { %258 = vmatpush.msra.mxu1 %v77_v34  ;;  %239 = vmatpush.msra.mxu0 %v60_v36  ;;  %v105_v51 = vld [vmem:[#allocation5 + $0x198] sm:$0xff]  ;;  %v104_v55 = vld [vmem:[#allocation5 + $0x190] sm:$0xff]  ;;  %v71_v58 = vld [vmem:[#allocation5 + $0x88] sm:$0xff] }
  0x21   :  { %298 = vmatpush.msra.mxu3 %v109_v35  ;;  %279 = vmatpush.msra.mxu2 %v92_v37  ;;  %v103_v59 = vld [vmem:[#allocation5 + $0x188] sm:$0xff]  ;;  %v54_v60 = vld [vmem:[#allocation5] sm:$0xff]  ;;  %v133_v62 = vld [vmem:[#allocation5 + $0x278] sm:$0xff] }
  0x22   :  { %259 = vmatpush.msra.mxu1 %v76_v38  ;;  %240 = vmatpush.msra.mxu0 %v59_v40  ;;  %v86_v61 = vld [vmem:[#allocation5 + $0x100] sm:$0xff]  ;;  %v165_v63 = vld [vmem:[#allocation5 + $0x378] sm:$0xff]  ;;  %v132_v2 = vld [vmem:[#allocation5 + $0x270] sm:$0xff] }
  0x23   :  { %299 = vmatpush.msra.mxu3 %v108_v39  ;;  %280 = vmatpush.msra.mxu2 %v91_v41  ;;  %v70_v0 = vld [vmem:[#allocation5 + $0x80] sm:$0xff]  ;;  %v149_v3 = vld [vmem:[#allocation5 + $0x2f8] sm:$0xff]  ;;  %v164_v4 = vld [vmem:[#allocation5 + $0x370] sm:$0xff] }
  0x24   :  { %260 = vmatpush.msra.mxu1 %v75_v42  ;;  %241 = vmatpush.msra.mxu0 %v58_v44  ;;  %v102_v1 = vld [vmem:[#allocation5 + $0x180] sm:$0xff]  ;;  %v181_v5 = vld [vmem:[#allocation5 + $0x3f8] sm:$0xff]  ;;  %v131_v6 = vld [vmem:[#allocation5 + $0x268] sm:$0xff] }
  0x25   :  { %300 = vmatpush.msra.mxu3 %v107_v43  ;;  %281 = vmatpush.msra.mxu2 %v90_v45  ;;  %v148_v7 = vld [vmem:[#allocation5 + $0x2f0] sm:$0xff]  ;;  %v163_v8 = vld [vmem:[#allocation5 + $0x368] sm:$0xff]  ;;  %v130_v10 = vld [vmem:[#allocation5 + $0x260] sm:$0xff] }
  0x26   :  { %261 = vmatpush.msra.mxu1 %v74_v46  ;;  %242 = vmatpush.msra.mxu0 %v57_v48  ;;  %v180_v9 = vld [vmem:[#allocation5 + $0x3f0] sm:$0xff]  ;;  %v147_v11 = vld [vmem:[#allocation5 + $0x2e8] sm:$0xff]  ;;  %v162_v12 = vld [vmem:[#allocation5 + $0x360] sm:$0xff] }
  0x27   :  { %301 = vmatpush.msra.mxu3 %v106_v47  ;;  %282 = vmatpush.msra.mxu2 %v89_v49  ;;  %v183_v13 = vld [vmem:[#allocation2] sm:$0xff]  ;;  %v185_v14 = vld [vmem:[#allocation2 + $0x10] sm:$0xff]  ;;  %v179_v15 = vld [vmem:[#allocation5 + $0x3e8] sm:$0xff] }
  0x28   :  { %262 = vmatpush.msra.mxu1 %v73_v50  ;;  %243 = vmatpush.msra.mxu0 %v56_v52  ;;  %v187_v16 = vld [vmem:[#allocation2 + $0x20] sm:$0xff]  ;;  %v189_v17 = vld [vmem:[#allocation2 + $0x30] sm:$0xff]  ;;  %199 = vst [vmem:[#allocation1] ss:$4 sm:$0xff] %v183_v13  ;;  %v129_v18 = vld [vmem:[#allocation5 + $0x258] sm:$0xff] }
  0x29   :  { %302 = vmatpush.msra.mxu3 %v105_v51  ;;  %283 = vmatpush.msra.mxu2 %v88_v53  ;;  %v146_v19 = vld [vmem:[#allocation5 + $0x2e0] sm:$0xff]  ;;  %201 = vst [vmem:[#allocation1 + $0x1] ss:$4 sm:$0xff] %v185_v14  ;;  %v161_v20 = vld [vmem:[#allocation5 + $0x358] sm:$0xff]  ;;  %v128_v22 = vld [vmem:[#allocation5 + $0x250] sm:$0xff] }
  0x2a   :  { %263 = vmatpush.msra.mxu1 %v72_v54  ;;  %244 = vmatpush.msra.mxu0 %v55_v56  ;;  %v178_v21 = vld [vmem:[#allocation5 + $0x3e0] sm:$0xff]  ;;  %203 = vst [vmem:[#allocation1 + $0x2] ss:$4 sm:$0xff] %v187_v16  ;;  %v145_v23 = vld [vmem:[#allocation5 + $0x2d8] sm:$0xff]  ;;  %v160_v24 = vld [vmem:[#allocation5 + $0x350] sm:$0xff] }
  0x2b   :  { %303 = vmatpush.msra.mxu3 %v104_v55  ;;  %284 = vmatpush.msra.mxu2 %v87_v57  ;;  %205 = vst [vmem:[#allocation1 + $0x3] ss:$4 sm:$0xff] %v189_v17  ;;  %v177_v25 = vld [vmem:[#allocation5 + $0x3d8] sm:$0xff]  ;;  %v127_v26 = vld [vmem:[#allocation5 + $0x248] sm:$0xff]  ;;  %v144_v27 = vld [vmem:[#allocation5 + $0x2d0] sm:$0xff] }
  0x2c   :  { %264 = vmatpush.msra.mxu1 %v71_v58  ;;  %245 = vmatpush.msra.mxu0 %v54_v60  ;;  %v159_v28 = vld [vmem:[#allocation5 + $0x348] sm:$0xff]  ;;  %v176_v29 = vld [vmem:[#allocation5 + $0x3d0] sm:$0xff]  ;;  %v126_v30 = vld [vmem:[#allocation5 + $0x240] sm:$0xff] }
  0x2d   :  { %304 = vmatpush.msra.mxu3 %v103_v59  ;;  %285 = vmatpush.msra.mxu2 %v86_v61  ;;  %v143_v31 = vld [vmem:[#allocation5 + $0x2c8] sm:$0xff]  ;;  %v186_v33 = vld [vmem:[#allocation2 + $0x18] sm:$0xff]  ;;  %v158_v34 = vld [vmem:[#allocation5 + $0x340] sm:$0xff] }
  0x2e   :  { %310 = vmatpush.msrb.mxu0 %v133_v62  ;;  %265 = vmatpush.msra.mxu1 %v70_v0  ;;  %v184_v32 = vld [vmem:[#allocation2 + $0x8] sm:$0xff]  ;;  %v125_v36 = vld [vmem:[#allocation5 + $0x238] sm:$0xff]  ;;  %v142_v37 = vld [vmem:[#allocation5 + $0x2c0] sm:$0xff]  ;;  %209 = vst [vmem:[#allocation1 + $0x21] ss:$4 sm:$0xff] %v186_v33 }
  0x2f   :  { %350 = vmatpush.msrb.mxu2 %v165_v63  ;;  %305 = vmatpush.msra.mxu3 %v102_v1  ;;  %v175_v35 = vld [vmem:[#allocation5 + $0x3c8] sm:$0xff]  ;;  %207 = vst [vmem:[#allocation1 + $0x20] ss:$4 sm:$0xff] %v184_v32  ;;  %v157_v39 = vld [vmem:[#allocation5 + $0x338] sm:$0xff]  ;;  %v174_v40 = vld [vmem:[#allocation5 + $0x3c0] sm:$0xff] }
  0x30   :  { %311 = vmatpush.msrb.mxu0 %v132_v2  ;;  %330 = vmatpush.msrb.mxu1 %v149_v3  ;;  %v188_v38 = vld [vmem:[#allocation2 + $0x28] sm:$0xff]  ;;  %v190_v41 = vld [vmem:[#allocation2 + $0x38] sm:$0xff]  ;;  %v124_v42 = vld [vmem:[#allocation5 + $0x230] sm:$0xff] }
  0x31   :  { %351 = vmatpush.msrb.mxu2 %v164_v4  ;;  %370 = vmatpush.msrb.mxu3 %v181_v5  ;;  %v141_v43 = vld [vmem:[#allocation5 + $0x2b8] sm:$0xff]  ;;  %v156_v44 = vld [vmem:[#allocation5 + $0x330] sm:$0xff]  ;;  %211 = vst [vmem:[#allocation1 + $0x22] ss:$4 sm:$0xff] %v188_v38  ;;  %v123_v46 = vld [vmem:[#allocation5 + $0x228] sm:$0xff] }
  0x32   :  { %312 = vmatpush.msrb.mxu0 %v131_v6  ;;  %331 = vmatpush.msrb.mxu1 %v148_v7  ;;  %v173_v45 = vld [vmem:[#allocation5 + $0x3b8] sm:$0xff]  ;;  %v140_v47 = vld [vmem:[#allocation5 + $0x2b0] sm:$0xff]  ;;  %213 = vst [vmem:[#allocation1 + $0x23] ss:$4 sm:$0xff] %v190_v41  ;;  %v155_v48 = vld [vmem:[#allocation5 + $0x328] sm:$0xff] }
  0x33   :  { %352 = vmatpush.msrb.mxu2 %v163_v8  ;;  %371 = vmatpush.msrb.mxu3 %v180_v9  ;;  %v172_v49 = vld [vmem:[#allocation5 + $0x3b0] sm:$0xff]  ;;  %v216_v50 = vld.sshfl [vmem:[#allocation1 + $0x10] sm:$0xff pattern:$0x73625140]  ;;  %v122_v51 = vld [vmem:[#allocation5 + $0x220] sm:$0xff] }
  0x34   :  { %313 = vmatpush.msrb.mxu0 %v130_v10  ;;  %332 = vmatpush.msrb.mxu1 %v147_v11  ;;  %v139_v52 = vld [vmem:[#allocation5 + $0x2a8] sm:$0xff]  ;;  %v154_v53 = vld [vmem:[#allocation5 + $0x320] sm:$0xff]  ;;  %v214_v55 = vld.sshfl [vmem:[#allocation1] sm:$0xff pattern:$0x73625140] }
  0x35   :  { %353 = vmatpush.msrb.mxu2 %v162_v12  ;;  %372 = vmatpush.msrb.mxu3 %v179_v15  ;;  %v171_v54 = vld [vmem:[#allocation5 + $0x3a8] sm:$0xff]  ;;  %v217_v56 = vld.sshfl [vmem:[#allocation1 + $0x18] sm:$0xff pattern:$0x73625140]  ;;  %v121_v57 = vld [vmem:[#allocation5 + $0x218] sm:$0xff] }
  0x36   :  { %314 = vmatpush.msrb.mxu0 %v129_v18  ;;  %333 = vmatpush.msrb.mxu1 %v146_v19  ;;  %v138_v58 = vld [vmem:[#allocation5 + $0x2a0] sm:$0xff]  ;;  %v153_v59 = vld [vmem:[#allocation5 + $0x318] sm:$0xff]  ;;  %v120_v62 = vld [vmem:[#allocation5 + $0x210] sm:$0xff] }
  0x37   :  { %354 = vmatpush.msrb.mxu2 %v161_v20  ;;  %373 = vmatpush.msrb.mxu3 %v178_v21  ;;  %v170_v60 = vld [vmem:[#allocation5 + $0x3a0] sm:$0xff]  ;;  %v137_v63 = vld [vmem:[#allocation5 + $0x298] sm:$0xff]  ;;  %v152_v0 = vld [vmem:[#allocation5 + $0x310] sm:$0xff] }
  0x38   :  { %315 = vmatpush.msrb.mxu0 %v128_v22  ;;  %334 = vmatpush.msrb.mxu1 %v145_v23  ;;  %v215_v61 = vld.sshfl [vmem:[#allocation1 + $0x8] sm:$0xff pattern:$0x73625140]  ;;  %v169_v1 = vld [vmem:[#allocation5 + $0x398] sm:$0xff]  ;;  %v119_v2 = vld [vmem:[#allocation5 + $0x208] sm:$0xff] }
  0x39   :  { %355 = vmatpush.msrb.mxu2 %v160_v24  ;;  %374 = vmatpush.msrb.mxu3 %v177_v25  ;;  %v136_v3 = vld [vmem:[#allocation5 + $0x290] sm:$0xff]  ;;  %v151_v4 = vld [vmem:[#allocation5 + $0x308] sm:$0xff]  ;;  %v118_v6 = vld [vmem:[#allocation5 + $0x200] sm:$0xff] }
  0x3a   :  { %316 = vmatpush.msrb.mxu0 %v127_v26  ;;  %335 = vmatpush.msrb.mxu1 %v144_v27  ;;  %v168_v5 = vld [vmem:[#allocation5 + $0x390] sm:$0xff]  ;;  %v135_v7 = vld [vmem:[#allocation5 + $0x288] sm:$0xff]  ;;  %v150_v8 = vld [vmem:[#allocation5 + $0x300] sm:$0xff] }
  0x3b   :  { %356 = vmatpush.msrb.mxu2 %v159_v28  ;;  %375 = vmatpush.msrb.mxu3 %v176_v29  ;;  %v167_v9 = vld [vmem:[#allocation5 + $0x388] sm:$0xff]  ;;  %v218_v10 = vld.sshfl [vmem:[#allocation1 + $0x20] sm:$0xff pattern:$0x73625140]  ;;  %v134_v12 = vld [vmem:[#allocation5 + $0x280] sm:$0xff] }
  0x3c   :  { %317 = vmatpush.msrb.mxu0 %v126_v30  ;;  %336 = vmatpush.msrb.mxu1 %v143_v31  ;;  %v220_v11 = vld.sshfl [vmem:[#allocation1 + $0x30] sm:$0xff pattern:$0x73625140]  ;;  %v166_v13 = vld [vmem:[#allocation5 + $0x380] sm:$0xff]  ;;  %v432_v31 = vld [vmem:[%s554_s2] ss:$0 sm:$0xff] }
  0x3d   :  { %357 = vmatpush.msrb.mxu2 %v158_v34  ;;  %376 = vmatpush.msrb.mxu3 %v175_v35  ;;  %v219_v14 = vld.sshfl [vmem:[#allocation1 + $0x28] sm:$0xff pattern:$0x73625140]  ;;  %v221_v15 = vld.sshfl [vmem:[#allocation1 + $0x38] sm:$0xff pattern:$0x73625140] }
  0x3e   :  { %318 = vmatpush.msrb.mxu0 %v125_v36  ;;  %337 = vmatpush.msrb.mxu1 %v142_v37 }
  0x3f   :  { %358 = vmatpush.msrb.mxu2 %v157_v39  ;;  %377 = vmatpush.msrb.mxu3 %v174_v40 }
  0x40   :  { %319 = vmatpush.msrb.mxu0 %v124_v42  ;;  %338 = vmatpush.msrb.mxu1 %v141_v43 }
  0x41   :  { %359 = vmatpush.msrb.mxu2 %v156_v44  ;;  %378 = vmatpush.msrb.mxu3 %v173_v45 }
  0x42   :  { %320 = vmatpush.msrb.mxu0 %v123_v46  ;;  %339 = vmatpush.msrb.mxu1 %v140_v47 }
  0x43   :  { %360 = vmatpush.msrb.mxu2 %v155_v48  ;;  %379 = vmatpush.msrb.mxu3 %v172_v49 }
  0x44   :  { %286 = vmatmul.f32.vlgmr.msra.gmra.mxu2 %v216_v50  ;;  %321 = vmatpush.msrb.mxu0 %v122_v51 }
  0x45   :  { %340 = vmatpush.msrb.mxu1 %v139_v52  ;;  %361 = vmatpush.msrb.mxu2 %v154_v53 }
  0x46   :  { %380 = vmatpush.msrb.mxu3 %v171_v54  ;;  %246 = vmatmul.f32.vlgmr.msra.gmra.mxu0 %v214_v55 }
  0x47   :  { %306 = vmatmul.f32.vlgmr.msra.gmra.mxu3 %v217_v56  ;;  %322 = vmatpush.msrb.mxu0 %v121_v57 }
  0x48   :  { %341 = vmatpush.msrb.mxu1 %v138_v58  ;;  %362 = vmatpush.msrb.mxu2 %v153_v59 }
  0x49   :  { %381 = vmatpush.msrb.mxu3 %v170_v60  ;;  %266 = vmatmul.f32.vlgmr.msra.gmra.mxu1 %v215_v61 }
  0x4a   :  { %323 = vmatpush.msrb.mxu0 %v120_v62  ;;  %342 = vmatpush.msrb.mxu1 %v137_v63 }
  0x4b   :  { %363 = vmatpush.msrb.mxu2 %v152_v0  ;;  %382 = vmatpush.msrb.mxu3 %v169_v1 }
  0x4c   :  { %324 = vmatpush.msrb.mxu0 %v119_v2  ;;  %343 = vmatpush.msrb.mxu1 %v136_v3 }
  0x4d   :  { %364 = vmatpush.msrb.mxu2 %v151_v4  ;;  %383 = vmatpush.msrb.mxu3 %v168_v5 }
  0x4e   :  { %325 = vmatpush.msrb.mxu0 %v118_v6  ;;  %344 = vmatpush.msrb.mxu1 %v135_v7 }
  0x4f   :  { %365 = vmatpush.msrb.mxu2 %v150_v8  ;;  %384 = vmatpush.msrb.mxu3 %v167_v9 }
  0x50   :  { %326 = vmatmul.f32.vlgmr.msrb.gmra.mxu0 %v218_v10  ;;  %366 = vmatmul.f32.vlgmr.msrb.gmra.mxu2 %v220_v11 }
  0x51   :  { %345 = vmatpush.msrb.mxu1 %v134_v12  ;;  %385 = vmatpush.msrb.mxu3 %v166_v13 }
  0x52   :  { %346 = vmatmul.f32.vlgmr.msrb.gmra.mxu1 %v219_v14  ;;  %386 = vmatmul.f32.vlgmr.msrb.gmra.mxu3 %v221_v15 }
  0xc3   :  { %v247_v16 = vpop.f32.mrf.mxu0 }
  0xc6   :  { %v267_v17 = vpop.f32.mrf.mxu1 }
  0xc7   :  { %v268_v18 = vadd.f32 %v267_v17, %v247_v16  ;;  %v287_v19 = vpop.f32.mrf.mxu2 }
  0xc9   :  { %v288_v20 = vadd.f32 %v287_v19, %v268_v18 }
  0xca   :  { %v307_v21 = vpop.f32.mrf.mxu3 }
  0xcb   :  { %v308_v22 = vadd.f32 %v307_v21, %v288_v20 }
  0xcd   :  { %v327_v23 = vpop.f32.mrf.mxu0 }
  0xce   :  { %v328_v24 = vadd.f32 %v327_v23, %v308_v22 }
  0xcf   :  { %v347_v25 = vpop.f32.mrf.mxu1 }
  0xd0   :  { %v348_v26 = vadd.f32 %v347_v25, %v328_v24 }
  0xd3   :  { %v367_v27 = vpop.f32.mrf.mxu2 }
  0xd4   :  { %v368_v28 = vadd.f32 %v367_v27, %v348_v26 }
  0xd5   :  { %v387_v29 = vpop.f32.mrf.mxu3 }
  0xd6   :  { %v388_v30 = vadd.f32 %v387_v29, %v368_v28 }
  0xd8   :  { %v400_v32 = vadd.f32 %v432_v31, %v388_v30 }
  0xda   :  { %401 = vst [vmem:[#allocation7] sm:$0xff] %v400_v32 }
  0xdb   :  { %405 = vsyncadd [#allocation4], 96  ;;  %s408_s28 = sshll.u32 %s555_s3, 4  ;;  %s517_s29 = smov [#allocation7]   ;;  %s409_s28 = int_to_ptr.hbm [resolvable:$true] %s408_s28 }
  0xdc   :  { %s406_s30 = sshll.u32 %s517_s29, 4  ;;  %s518_s4 = smov 32   ;;  %s407_s30 = int_to_ptr.vmem [resolvable:$true] %s406_s30 }
  0xdd   :  { %s519_s5 = smov 2  }
  0xde   :  { %414 = dma.vmem_to_hbm [thread:$0]  %s407_s30, 32, %s409_s28, [#allocation4], %s518_s4, %s518_s4, %s519_s5  }
  0xdf   :  { %509 = dma.done.wait [#allocation4], 128  }
  0xe0   :  { %510 = vsyncadd [#allocation4], 4294967168 }
  0xe1   :  { %419 = vsyncpa [#allocation3], 1 }
  0xe2   :  { %420 = vsyncpa [#allocation6], 1 }
  0xe3   :  { %421 = vsyncpa [#allocation4], 1 }

</bundles_post_ra>
